<compile_context>
chip_gen: v7x
topology: tpu7x:2x2x1
jax: 0.10.0
libtpu: 0.0.40
codegen_flags: <defaults>
</compile_context>

<pallas_src>
import jax
import jax.numpy as jnp
from jax.experimental import pallas as pl
from jax.experimental.pallas import tpu as pltpu


COMPRESSED_BIT = 4
LANES = 128


def _bit_red_kernel(x_ref, o_ref):
    bits = float(2 ** COMPRESSED_BIT)
    # Cast in-register (no-op for f32 inputs), then trunc(x*16) * (1/16),
    # which equals (int(x*16) * (255/16)) / 255 exactly in f32 for in-range x.
    x = x_ref[...].astype(jnp.float32)
    o_ref[...] = jnp.trunc(x * bits) * (1.0 / bits)


def bit_depth_reduction(x, *, tile_rows=8192):
    """Elementwise bit-depth reduction; accepts any shape/dtype, returns float32."""
    orig_shape = x.shape
    total = x.size

    # Flatten in the NATIVE dtype; the f32 cast happens inside the kernel so a
    # bf16/u8 caller streams half (or quarter) the input bytes.
    xf = x.reshape(-1)

    rows = pl.cdiv(total, LANES)
    padded_total = rows * LANES
    ragged = padded_total != total
    if ragged:
        # Rare fallback (size not divisible by 128): pad to a dense 128-lane
        # slab.  The common divisible case below is metadata-only reshapes.
        # TODO(synk): a 1-D ragged-block path could avoid this extra pass.
        xf = jnp.pad(xf, (0, padded_total - total))
    x2d = xf.reshape(rows, LANES)

    # Row-tile selection:
    #   * rows <= tile_rows  -> single full-array block (no per-step overhead,
    #     no forced split on single-TC chips).
    #   * otherwise          -> an EVEN number of near-equal blocks (multiple
    #     of 8 rows) so v7x's two TensorCores get balanced work; block stays
    #     <= ~4 MiB f32 so double-buffered in+out fits every generation.
    if rows <= tile_rows:
        tr = rows
    else:
        steps = 2 * pl.cdiv(rows, 2 * tile_rows)
        tr = ((pl.cdiv(rows, steps) + 7) // 8) * 8
    grid = (pl.cdiv(rows, tr),)

    in_bytes = total * jnp.dtype(x.dtype).itemsize
    cost = pl.CostEstimate(
        flops=2 * total,
        transcendentals=0,
        bytes_accessed=in_bytes + total * 4,
    )

    out2d = pl.pallas_call(
        _bit_red_kernel,
        out_shape=jax.ShapeDtypeStruct((rows, LANES), jnp.float32),
        grid_spec=pltpu.PrefetchScalarGridSpec(
            num_scalar_prefetch=0,
            grid=grid,
            in_specs=[pl.BlockSpec((tr, LANES), lambda i: (i, 0))],
            out_specs=pl.BlockSpec((tr, LANES), lambda i: (i, 0)),
        ),
        compiler_params=pltpu.CompilerParams(
            dimension_semantics=("parallel",),
            vmem_limit_bytes=48 << 20,  # clear v5e's 16 MiB scoped default
        ),
        cost_estimate=cost,
    )(x2d)

    out_flat = out2d.reshape(-1)
    if ragged:
        out_flat = out_flat[:total]
    return out_flat.reshape(orig_shape)


def bit_depth_reduction_ref(x):
    # Faithful transcription of the PyTorch forward (including the int cast).
    bits = 2 ** COMPRESSED_BIT
    xs_compress = (x * bits).astype(jnp.int32)          # truncates toward zero
    xs_255 = xs_compress.astype(jnp.float32) * (255.0 / bits)
    return xs_255 / 255.0


if __name__ == "__main__":
    k0, k1, k2 = jax.random.split(jax.random.PRNGKey(0), 3)

    # 1) Main case: image-like NCHW f32 input, size divisible by 128
    #    (zero-copy wrapper path).
    x = jax.random.uniform(k0, (2, 4, 16, 16), dtype=jnp.float32)
    out = jax.block_until_ready(bit_depth_reduction(x))
    ref = bit_depth_reduction_ref(x)
    assert out.shape == x.shape and out.dtype == jnp.float32
    assert jnp.allclose(out, ref, atol=1e-6), "mismatch vs reference (f32)"

    # 2) Ragged size (not divisible by 128) -> guarded pad/slice fallback.
    x2 = jax.random.uniform(k1, (3, 5, 7), dtype=jnp.float32)
    out2 = jax.block_until_ready(bit_depth_reduction(x2))
    ref2 = bit_depth_reduction_ref(x2)
    assert out2.shape == x2.shape and out2.dtype == jnp.float32
    assert jnp.allclose(out2, ref2, atol=1e-6), "mismatch vs reference (ragged)"

    # 3) bf16 input -> in-kernel cast path (half the input DMA bytes).
    x3 = jax.random.uniform(k2, (2, 4, 16, 16), dtype=jnp.bfloat16)
    out3 = jax.block_until_ready(bit_depth_reduction(x3))
    ref3 = bit_depth_reduction_ref(x3.astype(jnp.float32))
    assert out3.shape == x3.shape and out3.dtype == jnp.float32
    assert jnp.allclose(out3, ref3, atol=1e-6), "mismatch vs reference (bf16)"

    print("KERNEL_OK")
</pallas_src>

<mosaic_0001>
module attributes {stable_mosaic.version = 11 : i64} {
  func.func @_bit_red_kernel(%arg0: i32, %arg1: memref<16x128xf32, #tpu.memory_space<vmem>>, %arg2: memref<16x128xf32, #tpu.memory_space<vmem>>) attributes {dimension_semantics = [#tpu.dimension_semantics<parallel>], iteration_bounds = array<i64: 1>, scalar_prefetch = 0 : i64, scratch_operands = 0 : i64, tpu.core_type = #tpu.core_type<tc>, window_params = [{transform_indices = @transform_0, window_bounds = array<i64: 16, 128>}, {transform_indices = @transform_1, window_bounds = array<i64: 16, 128>}]} {
    %c0 = arith.constant 0 : index
    %c0_0 = arith.constant 0 : index
    %0 = vector.load %arg1[%c0, %c0_0] : memref<16x128xf32, #tpu.memory_space<vmem>>, vector<16x128xf32>
    %cst = arith.constant 1.600000e+01 : f32
    %1 = vector.broadcast %cst : f32 to vector<16x128xf32>
    %2 = arith.mulf %0, %1 : vector<16x128xf32>
    %cst_1 = arith.constant 0.000000e+00 : f32
    %3 = vector.broadcast %cst_1 : f32 to vector<16x128xf32>
    %4 = arith.cmpf olt, %2, %3 : vector<16x128xf32>
    %5 = math.ceil %2 : vector<16x128xf32>
    %6 = math.floor %2 : vector<16x128xf32>
    %7 = arith.select %4, %5, %6 : vector<16x128xi1>, vector<16x128xf32>
    %cst_2 = arith.constant 6.250000e-02 : f32
    %8 = vector.broadcast %cst_2 : f32 to vector<16x128xf32>
    %9 = arith.mulf %7, %8 : vector<16x128xf32>
    %c0_3 = arith.constant 0 : index
    %c0_4 = arith.constant 0 : index
    %10 = vector.load %arg2[%c0_3, %c0_4] : memref<16x128xf32, #tpu.memory_space<vmem>>, vector<16x128xf32>
    tpu.vector_store %arg2[%c0_3, %c0_4], %9 {strides = array<i32>} : memref<16x128xf32, #tpu.memory_space<vmem>>, vector<16x128xf32>,
    return
  }
  func.func @transform_0(%arg0: i32) -> (i32, i32) {
    %c0_i32 = arith.constant 0 : i32
    %c0_i32_0 = arith.constant 0 : i32
    return %arg0, %c0_i32 : i32, i32
  }
  func.func @transform_1(%arg0: i32) -> (i32, i32) {
    %c0_i32 = arith.constant 0 : i32
    %c0_i32_0 = arith.constant 0 : i32
    return %arg0, %c0_i32 : i32, i32
  }
}

</mosaic_0001>

<bundles_post_ra>
// kernel: tpu_custom_call.1
= control target key start
LH: loop header
LB: loop body
LE: loop exit
PB: predicated region body
PF: predicated region fallthrough
CT: control target
= control target key end

     0   :  { %6 = vsyncpa [#allocation3], 0  ;;  %s152_s0 = inlined_call_operand.hbm [shape: f32[16,128], index: 0, kind: input, shape index: {}]   ;;  %s153_s1 = inlined_call_operand.hbm [shape: f32[16,128], index: 1, kind: output, shape index: {}]  }
   0x1   :  { %7 = vsyncpa [#allocation4], 0  ;;  %s108_s6 = smov [#allocation2]   ;;  %s60_s10 = scalar_lea.hbm %s152_s0, 256 }
   0x2   :  { %s13_s7 = sshll.u32 %s108_s6, 4  ;;  %p61_p0 = scmp.ne.s32.totalorder %s152_s0, %s60_s10  ;;  %s14_s7 = int_to_ptr.vmem [resolvable:$true] %s13_s7 }
   0x3   :  { %p64_p1 = scmp.lt.u32.totalorder %s60_s10, %s152_s0 }
   0x5   :  { %p66_p2 = pnand %p64_p1, %p61_p0 }
   0x7   :  { %69 = shalt.err (!%p66_p2)
}
   0x8   :  { %s70_s15 = scalar_lea.vmem %s14_s7, 256  ;;  %p75_p4 = scmp.lt.s32.totalorder %s14_s7, %s14_s7 }
   0x9   :  { %p71_p3 = scmp.ne.s32.totalorder %s14_s7, %s70_s15  ;;  %p76_p5 = scmp.lt.s32.totalorder %s70_s15, %s70_s15 }
   0xb   :  { %p77_p6 = por %p76_p5, %p75_p4 }
   0xd   :  { %p78_p7 = pnand %p77_p6, %p71_p3 }
   0xf   :  { %81 = shalt.err (!%p78_p7)
}
  0x10   :  { %s109_s16 = smov 128   ;;  %s110_s17 = smov 8  }
  0x11   :  { %19 = dma.hbm_to_vmem [thread:$0]  %s152_s0, 256, %s14_s7, [#allocation3], %s109_s16, %s109_s16, %s110_s17  }
  0x12   :  { %104 = dma.done.wait [#allocation3], 256  }
  0x13   :  { %105 = vsyncadd [#allocation3], 4294967040  ;;  %v23_v0 = vld [vmem:[#allocation2] sm:$0xff]  ;;  %v24_v1 = vld [vmem:[#allocation2 + $0x8] sm:$0xff]  ;;  %s111_s20 = smov [#allocation5]  }
  0x14   :  { %v25_v2 = vmul.f32 16.0, %v23_v0  ;;  %v26_v3 = vmul.f32 16.0, %v24_v1  ;;  %s44_s21 = sshll.u32 %s111_s20, 4  ;;  %s45_s21 = int_to_ptr.vmem [resolvable:$true] %s44_s21 }
  0x15   :  { %s82_s0 = scalar_lea.vmem %s45_s21, 256  ;;  %p87_p9 = scmp.lt.s32.totalorder %s45_s21, %s45_s21 }
  0x16   :  { %vm27_vm0 = vcmp.lt.f32.partialorder %v25_v2, 0.0  ;;  %v29_v4 = vceil.f32 %v25_v2  ;;  %v31_v5 = vfloor.f32 %v25_v2  ;;  %vm28_vm1 = vcmp.lt.f32.partialorder %v26_v3, 0.0  ;;  %p83_p8 = scmp.ne.s32.totalorder %s45_s21, %s82_s0  ;;  %p88_p10 = scmp.lt.s32.totalorder %s82_s0, %s82_s0 }
  0x17   :  { %v30_v6 = vceil.f32 %v26_v3  ;;  %v32_v7 = vfloor.f32 %v26_v3 }
  0x18   :  { %v33_v8 = vsel %vm27_vm0, %v29_v4, %v31_v5  ;;  %p89_p11 = por %p88_p10, %p87_p9 }
  0x19   :  { %v35_v9 = vmul.f32 0.0625, %v33_v8  ;;  %v34_v10 = vsel %vm28_vm1, %v30_v6, %v32_v7 }
  0x1a   :  { %v36_v11 = vmul.f32 0.0625, %v34_v10  ;;  %p90_p12 = pnand %p89_p11, %p83_p8 }
  0x1b   :  { %37 = vst [vmem:[#allocation5] sm:$0xff] %v35_v9 }
  0x1c   :  { %38 = vst [vmem:[#allocation5 + $0x8] sm:$0xff] %v36_v11 }
  0x1d   :  { %93 = shalt.err (!%p90_p12)
}
  0x1e   :  { %s94_s24 = scalar_lea.hbm %s153_s1, 256 }
  0x1f   :  { %p95_p13 = scmp.ne.s32.totalorder %s153_s1, %s94_s24  ;;  %p98_p0 = scmp.lt.u32.totalorder %s94_s24, %s153_s1 }
  0x21   :  { %p100_p1 = pnand %p98_p0, %p95_p13 }
  0x23   :  { %103 = shalt.err (!%p100_p1)
}
  0x24   :  { %50 = dma.vmem_to_hbm [thread:$0]  %s45_s21, 256, %s153_s1, [#allocation4], %s109_s16, %s109_s16, %s110_s17  }
  0x25   :  { %106 = dma.done.wait [#allocation4], 256  }
  0x26   :  { %107 = vsyncadd [#allocation4], 4294967040 }
  0x27   :  { %54 = vsyncpa [#allocation3], 1 }
  0x28   :  { %55 = vsyncpa [#allocation4], 1 }

</bundles_post_ra>
